<compile_context>
chip_gen: v7x
topology: tpu7x:2x2x1
jax: 0.10.0
libtpu: 0.0.40
codegen_flags: <defaults>
</compile_context>

<pallas_src>
import functools

import jax
import jax.numpy as jnp
from jax.experimental import pallas as pl
from jax.experimental.pallas import tpu as pltpu

HIDDEN1 = 400
HIDDEN2 = 300
H1P = 512   # 400 padded to lane multiple
H2P = 384   # 300 padded to lane multiple


def _round_up(x, m):
    return ((x + m - 1) // m) * m


def _cdiv(a, b):
    return (a + b - 1) // b


def _critic_kernel(sa_ref,
                   w14_ref, b14_ref,
                   w2_ref, b2_ref, w5_ref, b5_ref,
                   w3_ref, w6_ref, b36_ref,
                   out_ref):
    # Inputs already bf16; f32 accumulation on the MXU.
    sa = sa_ref[...]

    # Fused layer 1 for BOTH heads: [TB, 2*H1P]  (cols 0:H1P = fc1, H1P: = fc4).
    h1 = (jnp.dot(sa, w14_ref[...], preferred_element_type=jnp.float32)
          + b14_ref[...])
    h1 = jnp.maximum(h1, 0.0).astype(jnp.bfloat16)

    # Layer 2 per head: two aligned [TB,512] x [512,384] matmuls.
    # The slices fall on a 512-lane boundary -> copy-free.
    h2a = jnp.dot(h1[:, :H1P], w2_ref[...], preferred_element_type=jnp.float32) + b2_ref[...]
    h2b = jnp.dot(h1[:, H1P:], w5_ref[...], preferred_element_type=jnp.float32) + b5_ref[...]
    h2a = jnp.maximum(h2a, 0.0)
    h2b = jnp.maximum(h2b, 0.0)

    # Output layer: N=1 per head -> VPU multiply + XLU lane reduction
    # (no MXU, no TBx768 concat materialization).
    q1 = jnp.sum(h2a * w3_ref[...], axis=-1, keepdims=True)   # [TB, 1]
    q2 = jnp.sum(h2b * w6_ref[...], axis=-1, keepdims=True)   # [TB, 1]
    q = jnp.concatenate([q1, q2], axis=-1) + b36_ref[...]     # [TB, 2]
    out_ref[...] = q.astype(out_ref.dtype)


def pack_critic_params(params, state_dim, action_dim):
    """One-time packing: transpose to (in, out), zero-pad to lane multiples,
    fuse the twin heads' layer-1, and cast the big matmul weights to bf16."""
    in_dim = state_dim + action_dim
    f32 = jnp.float32

    def pad_t(w_out_in, in_p, out_p):
        w = jnp.asarray(w_out_in, f32).T                   # (in, out)
        return jnp.pad(w, ((0, in_p - w.shape[0]), (0, out_p - w.shape[1])))

    # Layer 1 (fc1 || fc4) -> (in_dim, 2*H1P).
    w1 = pad_t(params["fc1_w"], in_dim, H1P)
    w4 = pad_t(params["fc4_w"], in_dim, H1P)
    w14 = jnp.concatenate([w1, w4], axis=1)
    b14 = jnp.concatenate([
        jnp.pad(jnp.asarray(params["fc1_b"], f32), (0, H1P - HIDDEN1)),
        jnp.pad(jnp.asarray(params["fc4_b"], f32), (0, H1P - HIDDEN1)),
    ]).reshape(1, 2 * H1P)

    # Layer 2 per head.
    w2 = pad_t(params["fc2_w"], H1P, H2P)
    w5 = pad_t(params["fc5_w"], H1P, H2P)
    b2 = jnp.pad(jnp.asarray(params["fc2_b"], f32), (0, H2P - HIDDEN2)).reshape(1, H2P)
    b5 = jnp.pad(jnp.asarray(params["fc5_b"], f32), (0, H2P - HIDDEN2)).reshape(1, H2P)

    # Output layer: (1, H2P) f32 rows for VPU-mul + lane-reduction in the kernel.
    w3r = jnp.pad(jnp.asarray(params["fc3_w"], f32), ((0, 0), (0, H2P - HIDDEN2)))
    w6r = jnp.pad(jnp.asarray(params["fc6_w"], f32), ((0, 0), (0, H2P - HIDDEN2)))
    b36 = jnp.concatenate([jnp.asarray(params["fc3_b"], f32),
                           jnp.asarray(params["fc6_b"], f32)]).reshape(1, 2)

    return {
        "w14": w14.astype(jnp.bfloat16),
        "b14": b14,
        "w2": w2.astype(jnp.bfloat16),
        "b2": b2,
        "w5": w5.astype(jnp.bfloat16),
        "b5": b5,
        "w3": w3r,    # tiny output rows kept f32
        "w6": w6r,
        "b36": b36,
    }


@functools.partial(jax.jit, static_argnames=("block_batch",))
def critic_forward(state, action, packed, block_batch=512):
    """Pallas equivalent of Critic.forward(state, action) -> (q1, q2)."""
    batch, state_dim = state.shape
    action_dim = action.shape[1]
    in_dim = state_dim + action_dim

    # Concatenate state||action once (cheap) and cast to bf16 in the wrapper so
    # the kernel does a single layer-1 dot and the input DMA is half-width.
    sa = jnp.concatenate([state.astype(jnp.bfloat16),
                          action.astype(jnp.bfloat16)], axis=1)

    # Balanced batch tiling: at least 2 tiles for batch >= 16 (v7x megacore),
    # and padding overhead capped at < 8 rows per tile.
    n_tiles = _cdiv(batch, block_batch)
    if batch >= 16:
        n_tiles = max(n_tiles, 2)
    tb = _round_up(_cdiv(batch, n_tiles), 8)
    b_pad = n_tiles * tb
    if b_pad != batch:
        sa = jnp.pad(sa, ((0, b_pad - batch), (0, 0)))
    grid = (n_tiles,)

    def const_spec(arr):
        # Whole-array block, constant index -> stays resident across grid steps.
        return pl.BlockSpec(arr.shape, lambda i: (0, 0))

    in_specs = [
        pl.BlockSpec((tb, in_dim), lambda i: (i, 0)),
        const_spec(packed["w14"]), const_spec(packed["b14"]),
        const_spec(packed["w2"]), const_spec(packed["b2"]),
        const_spec(packed["w5"]), const_spec(packed["b5"]),
        const_spec(packed["w3"]), const_spec(packed["w6"]),
        const_spec(packed["b36"]),
    ]
    out_specs = pl.BlockSpec((tb, 2), lambda i: (i, 0))
    out_shape = jax.ShapeDtypeStruct((b_pad, 2), jnp.float32)

    flops = 2 * b_pad * (in_dim * 2 * H1P + 2 * H1P * H2P + 2 * H2P)
    param_bytes = sum(int(v.size) * v.dtype.itemsize for v in packed.values())
    bytes_accessed = param_bytes + 2 * b_pad * in_dim + 4 * b_pad * 2

    # Explicit scoped-VMEM limit only needed for big tiles on v5e's 16 MiB default.
    vmem_limit = (32 * 1024 * 1024) if tb >= 512 else None

    out = pl.pallas_call(
        _critic_kernel,
        grid=grid,
        in_specs=in_specs,
        out_specs=out_specs,
        out_shape=out_shape,
        compiler_params=pltpu.CompilerParams(
            dimension_semantics=("parallel",),
            vmem_limit_bytes=vmem_limit,
        ),
        cost_estimate=pl.CostEstimate(flops=flops, transcendentals=0,
                                      bytes_accessed=bytes_accessed),
    )(sa,
      packed["w14"], packed["b14"],
      packed["w2"], packed["b2"], packed["w5"], packed["b5"],
      packed["w3"], packed["w6"], packed["b36"])

    q1 = out[:batch, 0:1]
    q2 = out[:batch, 1:2]
    return q1, q2


def init_critic_params(key, state_dim, action_dim):
    """Deterministic parameter init mirroring the module's __init__ shapes/ranges
    (PyTorch layout: weight is (out_features, in_features))."""
    in_dim = state_dim + action_dim
    ks = jax.random.split(key, 12)

    def uni(k, shape, lim):
        return jax.random.uniform(k, shape, jnp.float32, minval=-lim, maxval=lim)

    lim_in = 1.0 / jnp.sqrt(jnp.float32(in_dim))
    lim_h1 = 1.0 / jnp.sqrt(jnp.float32(HIDDEN1))
    lim_h2 = 1.0 / jnp.sqrt(jnp.float32(HIDDEN2))

    return {
        "fc1_w": uni(ks[0], (HIDDEN1, in_dim), lim_in),
        "fc1_b": uni(ks[1], (HIDDEN1,), lim_in),
        "fc2_w": uni(ks[2], (HIDDEN2, HIDDEN1), lim_h1),
        "fc2_b": uni(ks[3], (HIDDEN2,), lim_h1),
        "fc3_w": uni(ks[4], (1, HIDDEN2), 0.003),
        "fc3_b": uni(ks[5], (1,), lim_h2),
        "fc4_w": uni(ks[6], (HIDDEN1, in_dim), lim_in),
        "fc4_b": uni(ks[7], (HIDDEN1,), lim_in),
        "fc5_w": uni(ks[8], (HIDDEN2, HIDDEN1), lim_h1),
        "fc5_b": uni(ks[9], (HIDDEN2,), lim_h1),
        "fc6_w": uni(ks[10], (1, HIDDEN2), 0.003),
        "fc6_b": uni(ks[11], (1,), lim_h2),
    }


def _reference_forward(state, action, params):
    """Pure-JAX f32 reference implementing the PyTorch forward exactly."""
    sa = jnp.concatenate([state, action], axis=1)
    h = jax.nn.relu(sa @ params["fc1_w"].T + params["fc1_b"])
    h = jax.nn.relu(h @ params["fc2_w"].T + params["fc2_b"])
    q1 = h @ params["fc3_w"].T + params["fc3_b"]
    g = jax.nn.relu(sa @ params["fc4_w"].T + params["fc4_b"])
    g = jax.nn.relu(g @ params["fc5_w"].T + params["fc5_b"])
    q2 = g @ params["fc6_w"].T + params["fc6_b"]
    return q1, q2


if __name__ == "__main__":
    state_dim, action_dim, batch = 8, 4, 2
    key = jax.random.PRNGKey(0)
    k_params, k_state, k_action = jax.random.split(key, 3)

    params = init_critic_params(k_params, state_dim, action_dim)
    packed = pack_critic_params(params, state_dim, action_dim)

    state = jax.random.normal(k_state, (batch, state_dim), jnp.float32)
    action = jax.random.normal(k_action, (batch, action_dim), jnp.float32)

    q1, q2 = critic_forward(state, action, packed)
    jax.block_until_ready((q1, q2))

    r1, r2 = _reference_forward(state, action, params)
    assert q1.shape == (batch, 1) and q2.shape == (batch, 1)
    # bf16 MXU operands with f32 accumulation -> small quantization error vs f32 ref.
    assert jnp.allclose(q1, r1, atol=2e-3, rtol=2e-2), (q1, r1)
    assert jnp.allclose(q2, r2, atol=2e-3, rtol=2e-2), (q2, r2)

    # Also exercise a larger, non-tile-multiple batch (multi-step parallel grid).
    kb = jax.random.split(key, 2)
    state_b = jax.random.normal(kb[0], (300, state_dim), jnp.float32)
    action_b = jax.random.normal(kb[1], (300, action_dim), jnp.float32)
    q1b, q2b = critic_forward(state_b, action_b, packed)
    jax.block_until_ready((q1b, q2b))
    r1b, r2b = _reference_forward(state_b, action_b, params)
    assert jnp.allclose(q1b, r1b, atol=2e-3, rtol=2e-2)
    assert jnp.allclose(q2b, r2b, atol=2e-3, rtol=2e-2)

    print("KERNEL_OK")
</pallas_src>

<mosaic_0001>
module attributes {stable_mosaic.version = 11 : i64} {
  func.func @_critic_kernel(%arg0: i32, %arg1: memref<8x12xbf16, #tpu.memory_space<vmem>>, %arg2: memref<12x1024xbf16, #tpu.memory_space<vmem>>, %arg3: memref<1x1024xf32, #tpu.memory_space<vmem>>, %arg4: memref<512x384xbf16, #tpu.memory_space<vmem>>, %arg5: memref<1x384xf32, #tpu.memory_space<vmem>>, %arg6: memref<512x384xbf16, #tpu.memory_space<vmem>>, %arg7: memref<1x384xf32, #tpu.memory_space<vmem>>, %arg8: memref<1x384xf32, #tpu.memory_space<vmem>>, %arg9: memref<1x384xf32, #tpu.memory_space<vmem>>, %arg10: memref<1x2xf32, #tpu.memory_space<vmem>>, %arg11: memref<8x2xf32, #tpu.memory_space<vmem>>) attributes {dimension_semantics = [#tpu.dimension_semantics<parallel>], iteration_bounds = array<i64: 1>, scalar_prefetch = 0 : i64, scratch_operands = 0 : i64, tpu.core_type = #tpu.core_type<tc>, window_params = [{transform_indices = @transform_0, window_bounds = array<i64: 8, 12>}, {pipeline_mode = #tpu.pipeline_mode<synchronous>, transform_indices = @transform_1, window_bounds = array<i64: 12, 1024>}, {pipeline_mode = #tpu.pipeline_mode<synchronous>, transform_indices = @transform_2, window_bounds = array<i64: 1, 1024>}, {pipeline_mode = #tpu.pipeline_mode<synchronous>, transform_indices = @transform_3, window_bounds = array<i64: 512, 384>}, {pipeline_mode = #tpu.pipeline_mode<synchronous>, transform_indices = @transform_4, window_bounds = array<i64: 1, 384>}, {pipeline_mode = #tpu.pipeline_mode<synchronous>, transform_indices = @transform_5, window_bounds = array<i64: 512, 384>}, {pipeline_mode = #tpu.pipeline_mode<synchronous>, transform_indices = @transform_6, window_bounds = array<i64: 1, 384>}, {pipeline_mode = #tpu.pipeline_mode<synchronous>, transform_indices = @transform_7, window_bounds = array<i64: 1, 384>}, {pipeline_mode = #tpu.pipeline_mode<synchronous>, transform_indices = @transform_8, window_bounds = array<i64: 1, 384>}, {pipeline_mode = #tpu.pipeline_mode<synchronous>, transform_indices = @transform_9, window_bounds = array<i64: 1, 2>}, {transform_indices = @transform_10, window_bounds = array<i64: 8, 2>}]} {
    %c0 = arith.constant 0 : index
    %c0_0 = arith.constant 0 : index
    %0 = vector.load %arg1[%c0, %c0_0] : memref<8x12xbf16, #tpu.memory_space<vmem>>, vector<8x12xbf16>
    %c0_1 = arith.constant 0 : index
    %c0_2 = arith.constant 0 : index
    %1 = vector.load %arg2[%c0_1, %c0_2] : memref<12x1024xbf16, #tpu.memory_space<vmem>>, vector<12x1024xbf16>
    %cst = arith.constant dense<0.000000e+00> : vector<8x1024xf32>
    %2 = tpu.matmul %0, %1, %cst {dimension_numbers = #tpu.dot_dimension_numbers<[1], [0], [0], [1], [0, 0, 1, 1], [], []>} : vector<8x12xbf16>, vector<12x1024xbf16>, vector<8x1024xf32> -> vector<8x1024xf32>
    %c0_3 = arith.constant 0 : index
    %c0_4 = arith.constant 0 : index
    %3 = vector.load %arg3[%c0_3, %c0_4] : memref<1x1024xf32, #tpu.memory_space<vmem>>, vector<1x1024xf32>
    %4 = vector.broadcast %3 : vector<1x1024xf32> to vector<8x1024xf32>
    %5 = arith.addf %2, %4 : vector<8x1024xf32>
    %cst_5 = arith.constant 0.000000e+00 : f32
    %6 = vector.broadcast %cst_5 : f32 to vector<8x1024xf32>
    %7 = arith.maximumf %5, %6 : vector<8x1024xf32>
    %8 = arith.truncf %7 : vector<8x1024xf32> to vector<8x1024xbf16>
    %9 = vector.extract_strided_slice %8 {offsets = [0, 0], sizes = [8, 512], strides = [1, 1]} : vector<8x1024xbf16> to vector<8x512xbf16>
    %c0_6 = arith.constant 0 : index
    %c0_7 = arith.constant 0 : index
    %10 = vector.load %arg4[%c0_6, %c0_7] : memref<512x384xbf16, #tpu.memory_space<vmem>>, vector<512x384xbf16>
    %cst_8 = arith.constant dense<0.000000e+00> : vector<8x384xf32>
    %11 = tpu.matmul %9, %10, %cst_8 {dimension_numbers = #tpu.dot_dimension_numbers<[1], [0], [0], [1], [0, 0, 1, 1], [], []>} : vector<8x512xbf16>, vector<512x384xbf16>, vector<8x384xf32> -> vector<8x384xf32>
    %c0_9 = arith.constant 0 : index
    %c0_10 = arith.constant 0 : index
    %12 = vector.load %arg5[%c0_9, %c0_10] : memref<1x384xf32, #tpu.memory_space<vmem>>, vector<1x384xf32>
    %13 = vector.broadcast %12 : vector<1x384xf32> to vector<8x384xf32>
    %14 = arith.addf %11, %13 : vector<8x384xf32>
    %15 = vector.extract_strided_slice %8 {offsets = [0, 512], sizes = [8, 512], strides = [1, 1]} : vector<8x1024xbf16> to vector<8x512xbf16>
    %c0_11 = arith.constant 0 : index
    %c0_12 = arith.constant 0 : index
    %16 = vector.load %arg6[%c0_11, %c0_12] : memref<512x384xbf16, #tpu.memory_space<vmem>>, vector<512x384xbf16>
    %cst_13 = arith.constant dense<0.000000e+00> : vector<8x384xf32>
    %17 = tpu.matmul %15, %16, %cst_13 {dimension_numbers = #tpu.dot_dimension_numbers<[1], [0], [0], [1], [0, 0, 1, 1], [], []>} : vector<8x512xbf16>, vector<512x384xbf16>, vector<8x384xf32> -> vector<8x384xf32>
    %c0_14 = arith.constant 0 : index
    %c0_15 = arith.constant 0 : index
    %18 = vector.load %arg7[%c0_14, %c0_15] : memref<1x384xf32, #tpu.memory_space<vmem>>, vector<1x384xf32>
    %19 = vector.broadcast %18 : vector<1x384xf32> to vector<8x384xf32>
    %20 = arith.addf %17, %19 : vector<8x384xf32>
    %cst_16 = arith.constant 0.000000e+00 : f32
    %21 = vector.broadcast %cst_16 : f32 to vector<8x384xf32>
    %22 = arith.maximumf %14, %21 : vector<8x384xf32>
    %cst_17 = arith.constant 0.000000e+00 : f32
    %23 = vector.broadcast %cst_17 : f32 to vector<8x384xf32>
    %24 = arith.maximumf %20, %23 : vector<8x384xf32>
    %c0_18 = arith.constant 0 : index
    %c0_19 = arith.constant 0 : index
    %25 = vector.load %arg8[%c0_18, %c0_19] : memref<1x384xf32, #tpu.memory_space<vmem>>, vector<1x384xf32>
    %26 = vector.broadcast %25 : vector<1x384xf32> to vector<8x384xf32>
    %27 = arith.mulf %22, %26 : vector<8x384xf32>
    %cst_20 = arith.constant dense<0.000000e+00> : vector<8xf32>
    %28 = vector.multi_reduction <add>, %27, %cst_20 [1] : vector<8x384xf32> to vector<8xf32>
    %29 = vector.shape_cast %28 : vector<8xf32> to vector<8x1xf32>
    %c0_21 = arith.constant 0 : index
    %c0_22 = arith.constant 0 : index
    %30 = vector.load %arg9[%c0_21, %c0_22] : memref<1x384xf32, #tpu.memory_space<vmem>>, vector<1x384xf32>
    %31 = vector.broadcast %30 : vector<1x384xf32> to vector<8x384xf32>
    %32 = arith.mulf %24, %31 : vector<8x384xf32>
    %cst_23 = arith.constant dense<0.000000e+00> : vector<8xf32>
    %33 = vector.multi_reduction <add>, %32, %cst_23 [1] : vector<8x384xf32> to vector<8xf32>
    %34 = vector.shape_cast %33 : vector<8xf32> to vector<8x1xf32>
    %35 = tpu.concatenate %29, %34 in 1 : vector<8x1xf32>, vector<8x1xf32> -> vector<8x2xf32>
    %c0_24 = arith.constant 0 : index
    %c0_25 = arith.constant 0 : index
    %36 = vector.load %arg10[%c0_24, %c0_25] : memref<1x2xf32, #tpu.memory_space<vmem>>, vector<1x2xf32>
    %37 = vector.broadcast %36 : vector<1x2xf32> to vector<8x2xf32>
    %38 = arith.addf %35, %37 : vector<8x2xf32>
    %c0_26 = arith.constant 0 : index
    %c0_27 = arith.constant 0 : index
    %39 = vector.load %arg11[%c0_26, %c0_27] : memref<8x2xf32, #tpu.memory_space<vmem>>, vector<8x2xf32>
    tpu.vector_store %arg11[%c0_26, %c0_27], %38 {strides = array<i32>} : memref<8x2xf32, #tpu.memory_space<vmem>>, vector<8x2xf32>,
    return
  }
  func.func @transform_0(%arg0: i32) -> (i32, i32) {
    %c0_i32 = arith.constant 0 : i32
    %c0_i32_0 = arith.constant 0 : i32
    return %arg0, %c0_i32 : i32, i32
  }
  func.func @transform_1(%arg0: i32) -> (i32, i32) {
    %c0_i32 = arith.constant 0 : i32
    %c0_i32_0 = arith.constant 0 : i32
    %c0_i32_1 = arith.constant 0 : i32
    return %c0_i32, %c0_i32_0 : i32, i32
  }
  func.func @transform_2(%arg0: i32) -> (i32, i32) {
    %c0_i32 = arith.constant 0 : i32
    %c0_i32_0 = arith.constant 0 : i32
    %c0_i32_1 = arith.constant 0 : i32
    return %c0_i32, %c0_i32_0 : i32, i32
  }
  func.func @transform_3(%arg0: i32) -> (i32, i32) {
    %c0_i32 = arith.constant 0 : i32
    %c0_i32_0 = arith.constant 0 : i32
    %c0_i32_1 = arith.constant 0 : i32
    return %c0_i32, %c0_i32_0 : i32, i32
  }
  func.func @transform_4(%arg0: i32) -> (i32, i32) {
    %c0_i32 = arith.constant 0 : i32
    %c0_i32_0 = arith.constant 0 : i32
    %c0_i32_1 = arith.constant 0 : i32
    return %c0_i32, %c0_i32_0 : i32, i32
  }
  func.func @transform_5(%arg0: i32) -> (i32, i32) {
    %c0_i32 = arith.constant 0 : i32
    %c0_i32_0 = arith.constant 0 : i32
    %c0_i32_1 = arith.constant 0 : i32
    return %c0_i32, %c0_i32_0 : i32, i32
  }
  func.func @transform_6(%arg0: i32) -> (i32, i32) {
    %c0_i32 = arith.constant 0 : i32
    %c0_i32_0 = arith.constant 0 : i32
    %c0_i32_1 = arith.constant 0 : i32
    return %c0_i32, %c0_i32_0 : i32, i32
  }
  func.func @transform_7(%arg0: i32) -> (i32, i32) {
    %c0_i32 = arith.constant 0 : i32
    %c0_i32_0 = arith.constant 0 : i32
    %c0_i32_1 = arith.constant 0 : i32
    return %c0_i32, %c0_i32_0 : i32, i32
  }
  func.func @transform_8(%arg0: i32) -> (i32, i32) {
    %c0_i32 = arith.constant 0 : i32
    %c0_i32_0 = arith.constant 0 : i32
    %c0_i32_1 = arith.constant 0 : i32
    return %c0_i32, %c0_i32_0 : i32, i32
  }
  func.func @transform_9(%arg0: i32) -> (i32, i32) {
    %c0_i32 = arith.constant 0 : i32
    %c0_i32_0 = arith.constant 0 : i32
    %c0_i32_1 = arith.constant 0 : i32
    return %c0_i32, %c0_i32_0 : i32, i32
  }
  func.func @transform_10(%arg0: i32) -> (i32, i32) {
    %c0_i32 = arith.constant 0 : i32
    %c0_i32_0 = arith.constant 0 : i32
    return %arg0, %c0_i32 : i32, i32
  }
}

</mosaic_0001>

<bundles_post_ra>
// kernel: critic_forward.1
= control target key start
LH: loop header
LB: loop body
LE: loop exit
PB: predicated region body
PF: predicated region fallthrough
CT: control target
= control target key end

     0   :  { %15 = vsyncpa [#allocation3], 0  ;;  %s2924_s0 = inlined_call_operand.vmem [shape: bf16[8,12], index: 0, kind: input, shape index: {}]   ;;  %s2925_s1 = inlined_call_operand.hbm [shape: bf16[12,1024], index: 1, kind: input, shape index: {}]   ;;  %s2926_s2 = inlined_call_operand.vmem [shape: f32[1,1024], index: 2, kind: input, shape index: {}]   ;;  %s2927_s3 = inlined_call_operand.hbm [shape: bf16[512,384], index: 3, kind: input, shape index: {}]   ;;  %s2928_s4 = inlined_call_operand.vmem [shape: f32[1,384], index: 4, kind: input, shape index: {}]   ;;  %s2929_s5 = inlined_call_operand.hbm [shape: bf16[512,384], index: 5, kind: input, shape index: {}]   ;;  %s2930_s6 = inlined_call_operand.vmem [shape: f32[1,384], index: 6, kind: input, shape index: {}]   ;;  %s2931_s7 = inlined_call_operand.vmem [shape: f32[1,384], index: 7, kind: input, shape index: {}]   ;;  %s2932_s8 = inlined_call_operand.vmem [shape: f32[1,384], index: 8, kind: input, shape index: {}]   ;;  %s2933_s9 = inlined_call_operand.vmem [shape: f32[1,2], index: 9, kind: input, shape index: {}]   ;;  %s2934_s10 = inlined_call_operand.vmem [shape: f32[8,2], index: 10, kind: output, shape index: {}]  }
   0x1   :  { %16 = vsyncpa [#allocation5], 0  ;;  %s2722_s13 = smov [#allocation4]   ;;  %s2652_s17 = scalar_lea.hbm %s2927_s3, 12288 }
   0x2   :  { %s38_s14 = sshll.u32 %s2722_s13, 4  ;;  %p2653_p0 = scmp.ne.s32.totalorder %s2927_s3, %s2652_s17  ;;  %s39_s14 = int_to_ptr.vmem [resolvable:$true] %s38_s14 }
   0x3   :  { %p2656_p1 = scmp.lt.u32.totalorder %s2652_s17, %s2927_s3 }
   0x5   :  { %p2658_p2 = pnand %p2656_p1, %p2653_p0 }
   0x7   :  { %2661 = shalt.err (!%p2658_p2)
}
   0x8   :  { %s2662_s22 = scalar_lea.vmem %s39_s14, 12288  ;;  %p2667_p4 = scmp.lt.s32.totalorder %s39_s14, %s39_s14 }
   0x9   :  { %p2663_p3 = scmp.ne.s32.totalorder %s39_s14, %s2662_s22  ;;  %p2668_p5 = scmp.lt.s32.totalorder %s2662_s22, %s2662_s22 }
   0xb   :  { %p2669_p6 = por %p2668_p5, %p2667_p4 }
   0xd   :  { %p2670_p7 = pnand %p2669_p6, %p2663_p3 }
   0xf   :  { %2673 = shalt.err (!%p2670_p7)
}
  0x10   :  { %s2723_s23 = smov 192   ;;  %s2724_s24 = smov 12  }
  0x11   :  { %44 = dma.hbm_to_vmem [thread:$0]  %s2927_s3, 12288, %s39_s14, [#allocation5], %s2723_s23, %s2723_s23, %s2724_s24  }
  0x12   :  { %s2725_s27 = smov [#allocation2]   ;;  %s2674_s11 = scalar_lea.hbm %s2925_s1, 1024 }
  0x13   :  { %s24_s28 = sshll.u32 %s2725_s27, 4  ;;  %p2675_p8 = scmp.ne.s32.totalorder %s2925_s1, %s2674_s11  ;;  %s25_s28 = int_to_ptr.vmem [resolvable:$true] %s24_s28 }
  0x14   :  { %p2678_p9 = scmp.lt.u32.totalorder %s2674_s11, %s2925_s1 }
  0x16   :  { %p2680_p10 = pnand %p2678_p9, %p2675_p8 }
  0x18   :  { %2683 = shalt.err (!%p2680_p10)
}
  0x19   :  { %s2684_s17 = scalar_lea.vmem %s25_s28, 1024  ;;  %p2689_p12 = scmp.lt.s32.totalorder %s25_s28, %s25_s28 }
  0x1a   :  { %p2685_p11 = scmp.ne.s32.totalorder %s25_s28, %s2684_s17  ;;  %p2690_p13 = scmp.lt.s32.totalorder %s2684_s17, %s2684_s17 }
  0x1c   :  { %p2691_p0 = por %p2690_p13, %p2689_p12 }
  0x1e   :  { %p2692_p1 = pnand %p2691_p0, %p2685_p11 }
  0x20   :  { %2695 = shalt.err (!%p2692_p1)
}
  0x21   :  { %s2726_s3 = smov 512   ;;  %s2727_s14 = smov 32  }
  0x22   :  { %30 = dma.hbm_to_vmem [thread:$0]  %s2925_s1, 1024, %s25_s28, [#allocation3], %s2726_s3, %s2726_s3, %s2727_s14  }
  0x23   :  { %s2728_s20 = smov [#allocation6]   ;;  %s2696_s26 = scalar_lea.hbm %s2929_s5, 12288 }
  0x24   :  { %s52_s21 = sshll.u32 %s2728_s20, 4  ;;  %p2697_p2 = scmp.ne.s32.totalorder %s2929_s5, %s2696_s26  ;;  %s53_s21 = int_to_ptr.vmem [resolvable:$true] %s52_s21 }
  0x25   :  { %p2700_p3 = scmp.lt.u32.totalorder %s2696_s26, %s2929_s5 }
  0x27   :  { %p2702_p4 = pnand %p2700_p3, %p2697_p2 }
  0x29   :  { %2705 = shalt.err (!%p2702_p4)
}
  0x2a   :  { %s2706_s12 = scalar_lea.vmem %s53_s21, 12288  ;;  %p2711_p6 = scmp.lt.s32.totalorder %s53_s21, %s53_s21 }
  0x2b   :  { %p2707_p5 = scmp.ne.s32.totalorder %s53_s21, %s2706_s12  ;;  %p2712_p7 = scmp.lt.s32.totalorder %s2706_s12, %s2706_s12 }
  0x2d   :  { %p2713_p8 = por %p2712_p7, %p2711_p6 }
  0x2f   :  { %p2714_p9 = pnand %p2713_p8, %p2707_p5 }
  0x31   :  { %2717 = shalt.err (!%p2714_p9)
}
  0x32   :  { %58 = dma.hbm_to_vmem [thread:$0]  %s2929_s5, 12288, %s53_s21, [#allocation5], %s2723_s23, %s2723_s23, %s2724_s24  }
  0x33   :  { %2718 = dma.done.wait [#allocation3], 1024  }
  0x34   :  { %2719 = vsyncadd [#allocation3], 4294966272 }
  0x35   :  { %2720 = dma.done.wait [#allocation5], 24576  }
  0x36   :  { %2721 = vsyncadd [#allocation5], 4294942720  ;;  %v2729_v0 = vmov 0   ;;  %v78_v1 = vld [vmem:[#allocation2] sm:$0xff]  ;;  %vm164_vm0 = vcmask 1045504   ;;  %v79_v5 = vld [vmem:[#allocation2 + $0x8] sm:$0xff] }
  0x37   :  { %221 = vmatprep.mubr.bf16.mxu0 %v2729_v0  ;;  %262 = vmatprep.mubr.bf16.mxu1 %v2729_v0  ;;  %v82_v2 = vld [vmem:[#allocation2 + $0x20] sm:$0x33]  ;;  %v83_v6 = vld [vmem:[#allocation2 + $0x28] sm:$0x33]  ;;  %v80_v7 = vld [vmem:[#allocation2 + $0x10] sm:$0xff]  ;;  %vm160_vm1 = vcmask 97280  }
  0x38   :  { %v2080_v3 = vcombine.high %v78_v1, %v82_v2  ;;  %v2079_v4 = vcombine.low %v78_v1, %v82_v2  ;;  %v2082_v8 = vcombine.high %v79_v5, %v83_v6  ;;  %v2081_v9 = vcombine.low %v79_v5, %v83_v6  ;;  %v84_v10 = vld [vmem:[#allocation2 + $0x30] sm:$0x33]  ;;  %v81_v11 = vld [vmem:[#allocation2 + $0x18] sm:$0xff]  ;;  %v77_v17 = vld [vmem:[%s2924_s0] sm:$0xf] }
  0x39   :  { %v85_v12 = vld [vmem:[#allocation2 + $0x38] sm:$0x33]  ;;  %v2084_v14 = vcombine.high %v80_v7, %v84_v10  ;;  %v2083_v15 = vcombine.low %v80_v7, %v84_v10  ;;  %v2398_v22 = vld [vmem:[#allocation4 + $0x4] ss:$12 sps:$4 sm:$0xff]   ;;  %v2396_v23 = vld [vmem:[#allocation4] ss:$12 sps:$4 sm:$0xff]  }
  0x3a   :  { %2087 = vmatprep.subr.msk.bf16.mxu0 %vm164_vm0, %v2080_v3  ;;  %v166_v13 = vsel %vm164_vm0, %v2079_v4, 0  ;;  %v2086_v16 = vcombine.high %v81_v11, %v85_v12  ;;  %2089 = vmatprep.subr.msk.bf16.mxu1 %vm164_vm0, %v2082_v8  ;;  %v172_v18 = vsel %vm164_vm0, %v2081_v9, 0  ;;  %v2085_v19 = vcombine.low %v81_v11, %v85_v12  ;;  %v2401_v24 = vld [vmem:[#allocation4 + $0x1c] ss:$12 sps:$4 sm:$0xff]   ;;  %v2399_v25 = vld [vmem:[#allocation4 + $0x18] ss:$12 sps:$4 sm:$0xff]  }
  0x3b   :  { %190 = vmatpush1.bf16.msra.mxu0 %v166_v13  ;;  %231 = vmatpush1.bf16.msra.mxu1 %v172_v18  ;;  %v178_v20 = vsel %vm164_vm0, %v2083_v15, 0  ;;  %v2423_v26 = vld [vmem:[#allocation4 + $0xc8] ss:$12 sps:$4 sm:$0xff]   ;;  %v2402_v29 = vld [vmem:[#allocation4 + $0x30] ss:$12 sps:$4 sm:$0xff]   ;;  %v88_v8 = vlaneseq  ;;  %v2850_v11 = vld [vmem:[%s2926_s2] sm:$0xff] }
  0x3c   :  { %2091 = vmatprep.subr.msk.bf16.mxu0 %vm164_vm0, %v2084_v14  ;;  %2093 = vmatprep.subr.msk.bf16.mxu1 %vm164_vm0, %v2086_v16  ;;  %v184_v21 = vsel %vm164_vm0, %v2085_v19, 0  ;;  %v2424_v27 = vld [vmem:[#allocation4 + $0x8] ss:$12 sps:$4 sm:$0xff]   ;;  %v2428_v30 = vld [vmem:[#allocation4 + $0xe0] ss:$12 sps:$4 sm:$0xff]   ;;  %vm2061_vm2 = vcmask 7168  }
  0x3d   :  { %v2404_v28 = vld [vmem:[#allocation4 + $0x34] ss:$12 sps:$4 sm:$0xff]   ;;  %v2407_v32 = vld [vmem:[#allocation4 + $0x4c] ss:$12 sps:$4 sm:$0xff]   ;;  %v2410_v36 = vld [vmem:[#allocation4 + $0x64] ss:$12 sps:$4 sm:$0xff]  }
  0x3e   :  { %2088 = vmatmul.mubr.msk.bf16.vlgmr.msra.gmra.mrb[0].mxu0 %vm160_vm1, %v77_v17  ;;  %2090 = vmatmul.mubr.msk.bf16.vlgmr.msra.gmra.mrb[0].mxu1 %vm160_vm1, %v77_v17  ;;  %v2429_v31 = vld [vmem:[#allocation4 + $0x20] ss:$12 sps:$4 sm:$0xff]   ;;  %v2433_v33 = vld [vmem:[#allocation4 + $0xf8] ss:$12 sps:$4 sm:$0xff]   ;;  %v2405_v35 = vld [vmem:[#allocation4 + $0x48] ss:$12 sps:$4 sm:$0xff]  }
  0x3f   :  { %272 = vmatpush1.bf16.msra.mxu0 %v178_v20  ;;  %303 = vmatprep.mubr.bf16.mxu0 %v2729_v0  ;;  %v2434_v34 = vld [vmem:[#allocation4 + $0x38] ss:$12 sps:$4 sm:$0xff]   ;;  %v2438_v37 = vld [vmem:[#allocation4 + $0x110] ss:$12 sps:$4 sm:$0xff]   ;;  %v2408_v39 = vld [vmem:[#allocation4 + $0x60] ss:$12 sps:$4 sm:$0xff]  }
  0x40   :  { %313 = vmatpush1.bf16.msra.mxu1 %v184_v21  ;;  %344 = vmatprep.mubr.bf16.mxu1 %v2729_v0  ;;  %v2439_v38 = vld [vmem:[#allocation4 + $0x50] ss:$12 sps:$4 sm:$0xff]   ;;  %v2443_v41 = vld [vmem:[#allocation4 + $0x128] ss:$12 sps:$4 sm:$0xff]   ;;  %v2411_v43 = vld [vmem:[#allocation4 + $0x78] ss:$12 sps:$4 sm:$0xff]  }
  0x41   :  { %1026 = vmatprep.subr.bf16.mxu0 %v2398_v22  ;;  %2288 = vmatprep.subr.bf16.mxu1 %v2423_v26  ;;  %v2413_v40 = vld [vmem:[#allocation4 + $0x7c] ss:$12 sps:$4 sm:$0xff]   ;;  %v2448_v44 = vld [vmem:[#allocation4 + $0x140] ss:$12 sps:$4 sm:$0xff]   ;;  %v2422_v50 = vld [vmem:[#allocation4 + $0xc4] ss:$12 sps:$4 sm:$0xff]  }
  0x42   :  { %v2444_v42 = vld [vmem:[#allocation4 + $0x68] ss:$12 sps:$4 sm:$0xff]   ;;  %v2449_v46 = vld [vmem:[#allocation4 + $0x80] ss:$12 sps:$4 sm:$0xff]   ;;  %v2414_v47 = vld [vmem:[#allocation4 + $0x90] ss:$12 sps:$4 sm:$0xff]  }
  0x43   :  { %v2416_v45 = vld [vmem:[#allocation4 + $0x94] ss:$12 sps:$4 sm:$0xff]   ;;  %v2419_v48 = vld [vmem:[#allocation4 + $0xac] ss:$12 sps:$4 sm:$0xff]   ;;  %v2427_v52 = vld [vmem:[#allocation4 + $0xdc] ss:$12 sps:$4 sm:$0xff]  }
  0x44   :  { %v2417_v49 = vld [vmem:[#allocation4 + $0xa8] ss:$12 sps:$4 sm:$0xff]   ;;  %v2420_v51 = vld [vmem:[#allocation4 + $0xc0] ss:$12 sps:$4 sm:$0xff]   ;;  %v2425_v53 = vld [vmem:[#allocation4 + $0xd8] ss:$12 sps:$4 sm:$0xff]  }
  0x45   :  { %v2432_v54 = vld [vmem:[#allocation4 + $0xf4] ss:$12 sps:$4 sm:$0xff]   ;;  %v2430_v55 = vld [vmem:[#allocation4 + $0xf0] ss:$12 sps:$4 sm:$0xff]   ;;  %v2437_v56 = vld [vmem:[#allocation4 + $0x10c] ss:$12 sps:$4 sm:$0xff]  }
  0x46   :  { %2092 = vmatmul.mubr.msk.bf16.vlgmr.msra.gmra.mrb[4].mxu0 %vm160_vm1, %v77_v17  ;;  %2094 = vmatmul.mubr.msk.bf16.vlgmr.msra.gmra.mrb[4].mxu1 %vm160_vm1, %v77_v17  ;;  %v2435_v57 = vld [vmem:[#allocation4 + $0x108] ss:$12 sps:$4 sm:$0xff]   ;;  %v2442_v58 = vld [vmem:[#allocation4 + $0x124] ss:$12 sps:$4 sm:$0xff]   ;;  %v2440_v59 = vld [vmem:[#allocation4 + $0x120] ss:$12 sps:$4 sm:$0xff]  }
  0x47   :  { %1027 = vmatpush1.bf16.msra.mxu0 %v2396_v23  ;;  %2289 = vmatpush3.bf16.msra.mxu1 %v2424_v27  ;;  %v2447_v60 = vld [vmem:[#allocation4 + $0x13c] ss:$12 sps:$4 sm:$0xff]   ;;  %v2445_v61 = vld [vmem:[#allocation4 + $0x138] ss:$12 sps:$4 sm:$0xff]   ;;  %v2452_v62 = vld [vmem:[#allocation4 + $0x154] ss:$12 sps:$4 sm:$0xff]  }
  0x48   :  { %1028 = vmatprep.subr.bf16.mxu0 %v2401_v24  ;;  %2290 = vmatprep.subr.bf16.mxu1 %v2428_v30  ;;  %v2453_v63 = vld [vmem:[#allocation4 + $0x158] ss:$12 sps:$4 sm:$0xff]   ;;  %v2450_v0 = vld [vmem:[#allocation4 + $0x150] ss:$12 sps:$4 sm:$0xff]   ;;  %v2455_v4 = vld [vmem:[#allocation4 + $0x168] ss:$12 sps:$4 sm:$0xff]  }
  0x49   :  { %v2454_v1 = vld [vmem:[#allocation4 + $0x98] ss:$12 sps:$4 sm:$0xff]   ;;  %v2458_v3 = vld [vmem:[#allocation4 + $0x170] ss:$12 sps:$4 sm:$0xff]   ;;  %v2463_v7 = vld [vmem:[#allocation4 + $0x248] ss:$12 sps:$4 sm:$0xff]  }
  0x4a   :  { %v2457_v2 = vld [vmem:[#allocation4 + $0x16c] ss:$12 sps:$4 sm:$0xff]   ;;  %v2459_v5 = vld [vmem:[#allocation4 + $0xb0] ss:$12 sps:$4 sm:$0xff]   ;;  %v2842_v9 = vshrl.u32 %v88_v8, 7  ;;  %vm2071_vm3 = vcmask 15360  }
  0x4b   :  { %1029 = vmatpush1.bf16.msra.mxu0 %v2399_v25  ;;  %2291 = vmatpush3.bf16.msra.mxu1 %v2429_v31  ;;  %v2462_v6 = vld [vmem:[#allocation4 + $0x184] ss:$12 sps:$4 sm:$0xff]  }
  0x4c   :  { %1030 = vmatprep.subr.bf16.mxu0 %v2404_v28  ;;  %2292 = vmatprep.subr.bf16.mxu1 %v2433_v33  ;;  %v2845_v10 = vsub.s32 0, %v2842_v9  ;;  %v2853_v12 = vsub.s32 1, %v2842_v9  ;;  %v102_v13 = vsub.s32 3, %v2842_v9  ;;  %v2464_v33 = vld [vmem:[#allocation4 + $0x188] ss:$12 sps:$4 sm:$0xff]  }
  0x4d   :  { %v2494_v8 = vld [vmem:[#allocation4 + $0x218] ss:$12 sps:$4 sm:$0xff]  }
  0x4e   :  { %v91_v14 = vrot.slane %v2850_v11, %v2845_v10  ;;  %v95_v15 = vrot.slane %v2850_v11, %v2853_v12  ;;  %v103_v16 = vrot.slane %v2850_v11, %v102_v13  ;;  %v2497_v13 = vld [vmem:[#allocation4 + $0x22c] ss:$12 sps:$4 sm:$0xff]  }
  0x4f   :  { %1031 = vmatpush1.bf16.msra.mxu0 %v2402_v29  ;;  %2293 = vmatpush3.bf16.msra.mxu1 %v2434_v34 }
  0x50   :  { %1032 = vmatprep.subr.bf16.mxu0 %v2407_v32  ;;  %2294 = vmatprep.subr.bf16.mxu1 %v2438_v37  ;;  %v2460_v32 = vld [vmem:[#allocation4 + $0x180] ss:$12 sps:$4 sm:$0xff]  }
  0x53   :  { %1033 = vmatpush1.bf16.msra.mxu0 %v2405_v35  ;;  %2295 = vmatpush3.bf16.msra.mxu1 %v2439_v38  ;;  %v2467_v35 = vld [vmem:[#allocation4 + $0x19c] ss:$12 sps:$4 sm:$0xff]  }
  0x54   :  { %1034 = vmatprep.subr.bf16.mxu0 %v2410_v36  ;;  %2296 = vmatprep.subr.bf16.mxu1 %v2443_v41  ;;  %v2468_v36 = vld [vmem:[#allocation4 + $0x260] ss:$12 sps:$4 sm:$0xff]   ;;  %v2465_v41 = vld [vmem:[#allocation4 + $0x198] ss:$12 sps:$4 sm:$0xff]  }
  0x57   :  { %1035 = vmatpush1.bf16.msra.mxu0 %v2408_v39  ;;  %2297 = vmatpush3.bf16.msra.mxu1 %v2444_v42  ;;  %v2469_v42 = vld [vmem:[#allocation4 + $0x1a0] ss:$12 sps:$4 sm:$0xff]  }
  0x58   :  { %1036 = vmatprep.subr.bf16.mxu0 %v2413_v40  ;;  %2298 = vmatprep.subr.bf16.mxu1 %v2448_v44 }
  0x5b   :  { %1037 = vmatpush1.bf16.msra.mxu0 %v2411_v43  ;;  %2299 = vmatpush3.bf16.msra.mxu1 %v2449_v46  ;;  %v2473_v46 = vld [vmem:[#allocation4 + $0x278] ss:$12 sps:$4 sm:$0xff]  }
  0x5c   :  { %1038 = vmatprep.subr.bf16.mxu0 %v2416_v45  ;;  %2300 = vmatprep.subr.bf16.mxu1 %v2453_v63  ;;  %v2472_v45 = vld [vmem:[#allocation4 + $0x1b4] ss:$12 sps:$4 sm:$0xff]   ;;  %v110_v63 = vsub.s32 5, %v2842_v9 }
  0x5f   :  { %1039 = vmatpush1.bf16.msra.mxu0 %v2414_v47  ;;  %2301 = vmatpush3.bf16.msra.mxu1 %v2454_v1  ;;  %v2485_v1 = vld [vmem:[#allocation4 + $0x1f8] ss:$12 sps:$4 sm:$0xff]  }
  0x60   :  { %1040 = vmatprep.subr.bf16.mxu0 %v2419_v48  ;;  %2302 = vmatprep.subr.bf16.mxu1 %v2458_v3  ;;  %v2492_v3 = vld [vmem:[#allocation4 + $0x214] ss:$12 sps:$4 sm:$0xff]  }
  0x63   :  { %1041 = vmatpush1.bf16.msra.mxu0 %v2417_v49  ;;  %2303 = vmatpush3.bf16.msra.mxu1 %v2459_v5  ;;  %v111_v5 = vrot.slane %v2850_v11, %v110_v63  ;;  %v2556_v63 = vld [vmem:[#allocation6 + $0xe0] ss:$12 sps:$4 sm:$0xff]  }
  0x64   :  { %1042 = vmatprep.subr.bf16.mxu0 %v2422_v50  ;;  %2310 = vmatprep.subr.bf16.mxu1 %v2463_v7  ;;  %v2470_v50 = vld [vmem:[#allocation4 + $0x1b0] ss:$12 sps:$4 sm:$0xff]  }
  0x65   :  { %v2490_v7 = vld [vmem:[#allocation4 + $0x210] ss:$12 sps:$4 sm:$0xff]  }
  0x67   :  { %1043 = vmatpush1.bf16.msra.mxu0 %v2420_v51  ;;  %v2474_v51 = vld [vmem:[#allocation4 + $0x1b8] ss:$12 sps:$4 sm:$0xff]  }
  0x68   :  { %1044 = vmatprep.subr.bf16.mxu0 %v2427_v52  ;;  %v2477_v52 = vld [vmem:[#allocation4 + $0x1cc] ss:$12 sps:$4 sm:$0xff]  }
  0x6b   :  { %1045 = vmatpush1.bf16.msra.mxu0 %v2425_v53  ;;  %v2478_v53 = vld [vmem:[#allocation4 + $0x290] ss:$12 sps:$4 sm:$0xff]  }
  0x6c   :  { %1046 = vmatprep.subr.bf16.mxu0 %v2432_v54  ;;  %v2475_v54 = vld [vmem:[#allocation4 + $0x1c8] ss:$12 sps:$4 sm:$0xff]  }
  0x6f   :  { %1047 = vmatpush1.bf16.msra.mxu0 %v2430_v55  ;;  %v2479_v55 = vld [vmem:[#allocation4 + $0x1d0] ss:$12 sps:$4 sm:$0xff]  }
  0x70   :  { %1048 = vmatprep.subr.bf16.mxu0 %v2437_v56  ;;  %v2482_v56 = vld [vmem:[#allocation4 + $0x1e4] ss:$12 sps:$4 sm:$0xff]  }
  0x73   :  { %1049 = vmatpush1.bf16.msra.mxu0 %v2435_v57  ;;  %v2483_v57 = vld [vmem:[#allocation4 + $0x2a8] ss:$12 sps:$4 sm:$0xff]  }
  0x74   :  { %1050 = vmatprep.subr.bf16.mxu0 %v2442_v58  ;;  %v2870_v58 = vsub.s32 2, %v2842_v9 }
  0x77   :  { %1051 = vmatpush1.bf16.msra.mxu0 %v2440_v59  ;;  %v2480_v59 = vld [vmem:[#allocation4 + $0x1e0] ss:$12 sps:$4 sm:$0xff]  }
  0x78   :  { %1052 = vmatprep.subr.bf16.mxu0 %v2447_v60  ;;  %v2484_v60 = vld [vmem:[#allocation4 + $0x1e8] ss:$12 sps:$4 sm:$0xff]  }
  0x7b   :  { %1053 = vmatpush1.bf16.msra.mxu0 %v2445_v61  ;;  %v2487_v61 = vld [vmem:[#allocation4 + $0x1fc] ss:$12 sps:$4 sm:$0xff]  }
  0x7c   :  { %1054 = vmatprep.subr.bf16.mxu0 %v2452_v62  ;;  %v2488_v62 = vld [vmem:[#allocation4 + $0x2c0] ss:$12 sps:$4 sm:$0xff]  }
  0x7f   :  { %1055 = vmatpush1.bf16.msra.mxu0 %v2450_v0  ;;  %v99_v0 = vrot.slane %v2850_v11, %v2870_v58 }
  0x80   :  { %1056 = vmatprep.subr.bf16.mxu0 %v2457_v2  ;;  %v2489_v2 = vld [vmem:[#allocation4 + $0x200] ss:$12 sps:$4 sm:$0xff]  }
  0x83   :  { %1057 = vmatpush1.bf16.msra.mxu0 %v2455_v4  ;;  %v2493_v4 = vld [vmem:[#allocation4 + $0x2d8] ss:$12 sps:$4 sm:$0xff]  }
  0x84   :  { %1067 = vmatprep.subr.bf16.mxu0 %v2462_v6 }
 0x111   :  { %v223_v17 = vpop.f32.mrb[0].mxu0  ;;  %v2861_v20 = vpop.f32.mrb[0].mxu1 }
 0x112   :  { %v224_v18 = vadd.f32 %v223_v17, %v91_v14  ;;  %v225_v19 = vpop.f32.mrb[1].mxu0  ;;  %v266_v23 = vpop.f32.mrb[1].mxu1  ;;  %v265_v6 = vadd.f32 %v2861_v20, %v99_v0  ;;  %v2498_v14 = vld [vmem:[#allocation4 + $0x2f0] ss:$12 sps:$4 sm:$0xff]   ;;  %v2495_v17 = vld [vmem:[#allocation4 + $0x228] ss:$12 sps:$4 sm:$0xff]  }
 0x113   :  { %v226_v21 = vadd.f32 %v225_v19, %v95_v15  ;;  %v227_v22 = vpop.f32.mrb[2].mxu0  ;;  %v267_v26 = vadd.f32 %v266_v23, %v103_v16  ;;  %v268_v27 = vpop.f32.mrb[2].mxu1  ;;  %v2502_v19 = vld [vmem:[#allocation4 + $0x244] ss:$12 sps:$4 sm:$0xff]   ;;  %v2500_v23 = vld [vmem:[#allocation4 + $0x240] ss:$12 sps:$4 sm:$0xff]  }
 0x114   :  { %v353_v24 = vmax.f32 %v224_v18, 0.0  ;;  %v228_v25 = vpop.f32.mrb[3].mxu0  ;;  %v269_v29 = vpop.f32.mrb[3].mxu1  ;;  %v355_v16 = vmax.f32 %v265_v6, 0.0  ;;  %v2499_v18 = vld [vmem:[#allocation4 + $0x230] ss:$12 sps:$4 sm:$0xff]  }
 0x115   :  { %v354_v28 = vmax.f32 %v226_v21, 0.0  ;;  %v356_v30 = vmax.f32 %v267_v26, 0.0  ;;  %v2505_v21 = vld [vmem:[#allocation6 + $0x4] ss:$12 sps:$4 sm:$0xff]   ;;  %v2508_v25 = vld [vmem:[#allocation4 + $0x25c] ss:$12 sps:$4 sm:$0xff]  }
 0x116   :  { %v361_v34 = vpack.c.bf16 %v353_v24, %v353_v24  ;;  %v2877_v20 = vpack.c.bf16 %v355_v16, %v355_v16  ;;  %v2503_v24 = vld [vmem:[#allocation6] ss:$12 sps:$4 sm:$0xff]   ;;  %v2511_v26 = vld [vmem:[#allocation6 + $0x1c] ss:$12 sps:$4 sm:$0xff]   ;;  %v2509_v29 = vld [vmem:[#allocation6 + $0x18] ss:$12 sps:$4 sm:$0xff]  }
 0x117   :  { %v362_v31 = vpack.c.bf16 %v354_v28, %v354_v28  ;;  %v364_v37 = vpack.c.bf16 %v356_v30, %v356_v30  ;;  %v2506_v28 = vld [vmem:[#allocation4 + $0x258] ss:$12 sps:$4 sm:$0xff]   ;;  %v2514_v30 = vld [vmem:[#allocation4 + $0x274] ss:$12 sps:$4 sm:$0xff]   ;;  %v106_v16 = vsub.s32 4, %v2842_v9 }
 0x118   :  { %v2553_v0 = vld [vmem:[#allocation6 + $0xd8] ss:$12 sps:$4 sm:$0xff]  }
 0x119   :  { %1058 = vmatprep.mubr.bf16.mxu0 %v362_v31  ;;  %1140 = vmatprep.mubr.bf16.mxu1 %v362_v31  ;;  %v2863_v38 = vpop.f32.mrb[4].mxu0  ;;  %v2865_v40 = vpop.f32.mrb[4].mxu1  ;;  %v2517_v31 = vld [vmem:[#allocation6 + $0x34] ss:$12 sps:$4 sm:$0xff]   ;;  %v2565_v6 = vld [vmem:[#allocation6 + $0x10c] ss:$12 sps:$4 sm:$0xff]  }
 0x11a   :  { %1059 = vmatmul.mubr.bf16.vlgmr.msra.gmra.mrb[8].mxu0 %v361_v34  ;;  %1141 = vmatmul.mubr.bf16.vlgmr.msra.gmra.mrb[8].mxu1 %v361_v34  ;;  %v307_v39 = vpop.f32.mrb[5].mxu0  ;;  %v2867_v44 = vpop.f32.mrb[5].mxu1  ;;  %v2520_v34 = vld [vmem:[#allocation4 + $0x28c] ss:$12 sps:$4 sm:$0xff]  }
 0x11b   :  { %1068 = vmatpush1.bf16.msra.mxu0 %v2460_v32  ;;  %2311 = vmatpush3.bf16.msra.mxu1 %v2464_v33  ;;  %v309_v43 = vpop.f32.mrb[6].mxu0  ;;  %v350_v48 = vpop.f32.mrb[6].mxu1  ;;  %v308_v15 = vadd.f32 %v307_v39, %v111_v5  ;;  %v2512_v32 = vld [vmem:[#allocation4 + $0x270] ss:$12 sps:$4 sm:$0xff]   ;;  %v2562_v5 = vld [vmem:[#allocation6 + $0x38] ss:$12 sps:$4 sm:$0xff]  }
 0x11c   :  { %1069 = vmatprep.subr.bf16.mxu0 %v2467_v35  ;;  %2312 = vmatprep.subr.bf16.mxu1 %v2468_v36  ;;  %v310_v47 = vpop.f32.mrb[7].mxu0  ;;  %v351_v49 = vpop.f32.mrb[7].mxu1  ;;  %v2515_v33 = vld [vmem:[#allocation6 + $0x30] ss:$12 sps:$4 sm:$0xff]   ;;  %v2523_v35 = vld [vmem:[#allocation6 + $0x4c] ss:$12 sps:$4 sm:$0xff]  }
 0x11d   :  { %1099 = vmatprep.mubr.bf16.mxu0 %v364_v37  ;;  %1180 = vmatprep.mubr.bf16.mxu1 %v364_v37  ;;  %v358_v22 = vmax.f32 %v308_v15, 0.0  ;;  %v2518_v36 = vld [vmem:[#allocation4 + $0x288] ss:$12 sps:$4 sm:$0xff]   ;;  %v2526_v39 = vld [vmem:[#allocation4 + $0x2a4] ss:$12 sps:$4 sm:$0xff]  }
 0x11e   :  { %v2521_v37 = vld [vmem:[#allocation6 + $0x48] ss:$12 sps:$4 sm:$0xff]   ;;  %v2527_v43 = vld [vmem:[#allocation6 + $0x60] ss:$12 sps:$4 sm:$0xff]   ;;  %v2530_v47 = vld [vmem:[#allocation4 + $0x2b8] ss:$12 sps:$4 sm:$0xff]  }
 0x11f   :  { %1070 = vmatpush1.bf16.msra.mxu0 %v2465_v41  ;;  %2313 = vmatpush3.bf16.msra.mxu1 %v2469_v42  ;;  %v2879_v27 = vpack.c.bf16 %v358_v22, %v358_v22  ;;  %v2529_v41 = vld [vmem:[#allocation6 + $0x64] ss:$12 sps:$4 sm:$0xff]   ;;  %v2524_v42 = vld [vmem:[#allocation4 + $0x2a0] ss:$12 sps:$4 sm:$0xff]   ;;  %v2571_v15 = vld [vmem:[#allocation6 + $0x128] ss:$12 sps:$4 sm:$0xff]  }
 0x120   :  { %1071 = vmatprep.subr.bf16.mxu0 %v2472_v45  ;;  %2314 = vmatprep.subr.bf16.mxu1 %v2473_v46  ;;  %v2532_v45 = vld [vmem:[#allocation4 + $0x2bc] ss:$12 sps:$4 sm:$0xff]   ;;  %v2533_v48 = vld [vmem:[#allocation6 + $0x78] ss:$12 sps:$4 sm:$0xff]   ;;  %v2538_v49 = vld [vmem:[#allocation4 + $0x2d4] ss:$12 sps:$4 sm:$0xff]  }
 0x121   :  { %v2535_v46 = vld [vmem:[#allocation6 + $0x7c] ss:$12 sps:$4 sm:$0xff]   ;;  %v118_v22 = vsub.s32 7, %v2842_v9 }
 0x123   :  { %1072 = vmatpush1.bf16.msra.mxu0 %v2470_v50  ;;  %2315 = vmatpush3.bf16.msra.mxu1 %v2474_v51  ;;  %v2541_v50 = vld [vmem:[#allocation6 + $0x94] ss:$12 sps:$4 sm:$0xff]   ;;  %v2536_v51 = vld [vmem:[#allocation4 + $0x2d0] ss:$12 sps:$4 sm:$0xff]  }
 0x124   :  { %1073 = vmatprep.subr.bf16.mxu0 %v2477_v52  ;;  %2316 = vmatprep.subr.bf16.mxu1 %v2478_v53  ;;  %v2539_v52 = vld [vmem:[#allocation6 + $0x90] ss:$12 sps:$4 sm:$0xff]   ;;  %v2544_v53 = vld [vmem:[#allocation4 + $0x2ec] ss:$12 sps:$4 sm:$0xff]  }
 0x127   :  { %1074 = vmatpush1.bf16.msra.mxu0 %v2475_v54  ;;  %2317 = vmatpush3.bf16.msra.mxu1 %v2479_v55  ;;  %v2547_v54 = vld [vmem:[#allocation6 + $0xac] ss:$12 sps:$4 sm:$0xff]   ;;  %v2542_v55 = vld [vmem:[#allocation4 + $0x2e8] ss:$12 sps:$4 sm:$0xff]  }
 0x128   :  { %1075 = vmatprep.subr.bf16.mxu0 %v2482_v56  ;;  %2318 = vmatprep.subr.bf16.mxu1 %v2483_v57  ;;  %v2545_v56 = vld [vmem:[#allocation6 + $0xa8] ss:$12 sps:$4 sm:$0xff]   ;;  %v2550_v57 = vld [vmem:[#allocation6 + $0xc4] ss:$12 sps:$4 sm:$0xff]  }
 0x12b   :  { %1076 = vmatpush1.bf16.msra.mxu0 %v2480_v59  ;;  %2319 = vmatpush3.bf16.msra.mxu1 %v2484_v60  ;;  %v2551_v59 = vld [vmem:[#allocation6 + $0xc8] ss:$12 sps:$4 sm:$0xff]   ;;  %v2548_v60 = vld [vmem:[#allocation6 + $0xc0] ss:$12 sps:$4 sm:$0xff]  }
 0x12c   :  { %1077 = vmatprep.subr.bf16.mxu0 %v2487_v61  ;;  %2320 = vmatprep.subr.bf16.mxu1 %v2488_v62  ;;  %v2552_v61 = vld [vmem:[#allocation6 + $0x8] ss:$12 sps:$4 sm:$0xff]  }
 0x12d   :  { %v2555_v62 = vld [vmem:[#allocation6 + $0xdc] ss:$12 sps:$4 sm:$0xff]  }
 0x12f   :  { %1078 = vmatpush1.bf16.msra.mxu0 %v2485_v1  ;;  %2321 = vmatpush3.bf16.msra.mxu1 %v2489_v2  ;;  %v2557_v1 = vld [vmem:[#allocation6 + $0x20] ss:$12 sps:$4 sm:$0xff]  }
 0x130   :  { %1079 = vmatprep.subr.bf16.mxu0 %v2492_v3  ;;  %2322 = vmatprep.subr.bf16.mxu1 %v2493_v4  ;;  %v2560_v2 = vld [vmem:[#allocation6 + $0xf4] ss:$12 sps:$4 sm:$0xff]   ;;  %v2561_v3 = vld [vmem:[#allocation6 + $0xf8] ss:$12 sps:$4 sm:$0xff]   ;;  %v2558_v4 = vld [vmem:[#allocation6 + $0xf0] ss:$12 sps:$4 sm:$0xff]  }
 0x133   :  { %1080 = vmatpush1.bf16.msra.mxu0 %v2490_v7  ;;  %2323 = vmatpush3.bf16.msra.mxu1 %v2494_v8  ;;  %v2566_v7 = vld [vmem:[#allocation6 + $0x110] ss:$12 sps:$4 sm:$0xff]   ;;  %v2563_v8 = vld [vmem:[#allocation6 + $0x108] ss:$12 sps:$4 sm:$0xff]  }
 0x134   :  { %1081 = vmatprep.subr.bf16.mxu0 %v2497_v13  ;;  %2324 = vmatprep.subr.bf16.mxu1 %v2498_v14  ;;  %v2567_v13 = vld [vmem:[#allocation6 + $0x50] ss:$12 sps:$4 sm:$0xff]  }
 0x135   :  { %v2570_v14 = vld [vmem:[#allocation6 + $0x124] ss:$12 sps:$4 sm:$0xff]  }
 0x137   :  { %1082 = vmatpush1.bf16.msra.mxu0 %v2495_v17  ;;  %2325 = vmatpush3.bf16.msra.mxu1 %v2499_v18  ;;  %v2568_v17 = vld [vmem:[#allocation6 + $0x120] ss:$12 sps:$4 sm:$0xff]   ;;  %v2572_v18 = vld [vmem:[#allocation6 + $0x68] ss:$12 sps:$4 sm:$0xff]  }
 0x138   :  { %1083 = vmatprep.subr.bf16.mxu0 %v2502_v19  ;;  %1845 = vmatprep.subr.bf16.mxu1 %v2505_v21  ;;  %v2575_v19 = vld [vmem:[#allocation6 + $0x13c] ss:$12 sps:$4 sm:$0xff]   ;;  %v2576_v21 = vld [vmem:[#allocation6 + $0x140] ss:$12 sps:$4 sm:$0xff]  }
 0x13a   :  { %1181 = vmatmul.mubr.bf16.vlgmr.msra.gmra.mrb[12].mxu1 %v2877_v20 }
 0x13b   :  { %1084 = vmatpush1.bf16.msra.mxu0 %v2500_v23  ;;  %1846 = vmatpush1.bf16.msra.mxu1 %v2503_v24  ;;  %v2573_v23 = vld [vmem:[#allocation6 + $0x138] ss:$12 sps:$4 sm:$0xff]   ;;  %v2577_v24 = vld [vmem:[#allocation6 + $0x80] ss:$12 sps:$4 sm:$0xff]  }
 0x13c   :  { %1085 = vmatprep.subr.bf16.mxu0 %v2508_v25  ;;  %1847 = vmatprep.subr.bf16.mxu1 %v2511_v26  ;;  %v2580_v25 = vld [vmem:[#allocation6 + $0x154] ss:$12 sps:$4 sm:$0xff]   ;;  %v2581_v26 = vld [vmem:[#allocation6 + $0x158] ss:$12 sps:$4 sm:$0xff]  }
 0x13d   :  { %1877 = vmatprep.mubr.bf16.mxu1 %v2879_v27 }
 0x13f   :  { %1086 = vmatpush1.bf16.msra.mxu0 %v2506_v28  ;;  %1848 = vmatpush1.bf16.msra.mxu1 %v2509_v29  ;;  %v2578_v29 = vld [vmem:[#allocation6 + $0x150] ss:$12 sps:$4 sm:$0xff]  }
 0x140   :  { %1087 = vmatprep.subr.bf16.mxu0 %v2514_v30  ;;  %1849 = vmatprep.subr.bf16.mxu1 %v2517_v31  ;;  %v2582_v30 = vld [vmem:[#allocation6 + $0x98] ss:$12 sps:$4 sm:$0xff]  }
 0x141   :  { %v2585_v31 = vld [vmem:[#allocation6 + $0x16c] ss:$12 sps:$4 sm:$0xff]  }
 0x143   :  { %1088 = vmatpush1.bf16.msra.mxu0 %v2512_v32  ;;  %1850 = vmatpush1.bf16.msra.mxu1 %v2515_v33  ;;  %v2586_v32 = vld [vmem:[#allocation6 + $0x170] ss:$12 sps:$4 sm:$0xff]  }
 0x144   :  { %1089 = vmatprep.subr.bf16.mxu0 %v2520_v34  ;;  %1851 = vmatprep.subr.bf16.mxu1 %v2523_v35  ;;  %v2583_v35 = vld [vmem:[#allocation6 + $0x168] ss:$12 sps:$4 sm:$0xff]  }
 0x147   :  { %1090 = vmatpush1.bf16.msra.mxu0 %v2518_v36  ;;  %1852 = vmatpush1.bf16.msra.mxu1 %v2521_v37  ;;  %v2587_v36 = vld [vmem:[#allocation6 + $0xb0] ss:$12 sps:$4 sm:$0xff]  }
 0x148   :  { %1091 = vmatprep.subr.bf16.mxu0 %v2526_v39  ;;  %1853 = vmatprep.subr.bf16.mxu1 %v2529_v41  ;;  %v2590_v37 = vld [vmem:[#allocation6 + $0x184] ss:$12 sps:$4 sm:$0xff]   ;;  %v2591_v39 = vld [vmem:[#allocation6 + $0x248] ss:$12 sps:$4 sm:$0xff]  }
 0x14b   :  { %1092 = vmatpush1.bf16.msra.mxu0 %v2524_v42  ;;  %1854 = vmatpush1.bf16.msra.mxu1 %v2527_v43  ;;  %v2588_v42 = vld [vmem:[#allocation6 + $0x180] ss:$12 sps:$4 sm:$0xff]   ;;  %v2592_v43 = vld [vmem:[#allocation6 + $0x188] ss:$12 sps:$4 sm:$0xff]  }
 0x14c   :  { %1093 = vmatprep.subr.bf16.mxu0 %v2532_v45  ;;  %1855 = vmatprep.subr.bf16.mxu1 %v2535_v46  ;;  %v2595_v45 = vld [vmem:[#allocation6 + $0x19c] ss:$12 sps:$4 sm:$0xff]   ;;  %v2596_v46 = vld [vmem:[#allocation6 + $0x260] ss:$12 sps:$4 sm:$0xff]  }
 0x14f   :  { %1094 = vmatpush1.bf16.msra.mxu0 %v2530_v47  ;;  %1856 = vmatpush1.bf16.msra.mxu1 %v2533_v48  ;;  %v2593_v47 = vld [vmem:[#allocation6 + $0x198] ss:$12 sps:$4 sm:$0xff]   ;;  %v2597_v48 = vld [vmem:[#allocation6 + $0x1a0] ss:$12 sps:$4 sm:$0xff]  }
 0x150   :  { %1095 = vmatprep.subr.bf16.mxu0 %v2538_v49  ;;  %1857 = vmatprep.subr.bf16.mxu1 %v2541_v50  ;;  %v2600_v49 = vld [vmem:[#allocation6 + $0x1b4] ss:$12 sps:$4 sm:$0xff]   ;;  %v2601_v50 = vld [vmem:[#allocation6 + $0x278] ss:$12 sps:$4 sm:$0xff]  }
 0x153   :  { %1096 = vmatpush1.bf16.msra.mxu0 %v2536_v51  ;;  %1858 = vmatpush1.bf16.msra.mxu1 %v2539_v52  ;;  %v2598_v51 = vld [vmem:[#allocation6 + $0x1b0] ss:$12 sps:$4 sm:$0xff]   ;;  %v2602_v52 = vld [vmem:[#allocation6 + $0x1b8] ss:$12 sps:$4 sm:$0xff]  }
 0x154   :  { %1097 = vmatprep.subr.bf16.mxu0 %v2544_v53  ;;  %1859 = vmatprep.subr.bf16.mxu1 %v2547_v54  ;;  %v2605_v53 = vld [vmem:[#allocation6 + $0x1cc] ss:$12 sps:$4 sm:$0xff]   ;;  %v2606_v54 = vld [vmem:[#allocation6 + $0x290] ss:$12 sps:$4 sm:$0xff]  }
 0x157   :  { %1098 = vmatpush1.bf16.msra.mxu0 %v2542_v55  ;;  %1860 = vmatpush1.bf16.msra.mxu1 %v2545_v56  ;;  %v2603_v55 = vld [vmem:[#allocation6 + $0x1c8] ss:$12 sps:$4 sm:$0xff]   ;;  %v2607_v56 = vld [vmem:[#allocation6 + $0x1d0] ss:$12 sps:$4 sm:$0xff]  }
 0x158   :  { %1861 = vmatprep.subr.bf16.mxu1 %v2550_v57  ;;  %2332 = vmatprep.subr.bf16.mxu0 %v2551_v59  ;;  %v2610_v57 = vld [vmem:[#allocation6 + $0x1e4] ss:$12 sps:$4 sm:$0xff]   ;;  %v2611_v59 = vld [vmem:[#allocation6 + $0x2a8] ss:$12 sps:$4 sm:$0xff]  }
 0x15a   :  { %1100 = vmatmul.mubr.bf16.vlgmr.msra.gmra.mrb[8].mxu0 %v2877_v20  ;;  %v107_v20 = vrot.slane %v2850_v11, %v106_v16  ;;  %v2630_v16 = vld [vmem:[#allocation6 + $0x244] ss:$12 sps:$4 sm:$0xff]  }
 0x15b   :  { %1862 = vmatpush1.bf16.msra.mxu1 %v2548_v60  ;;  %2333 = vmatpush3.bf16.msra.mxu0 %v2552_v61  ;;  %v114_v60 = vsub.s32 6, %v2842_v9  ;;  %v2608_v61 = vld [vmem:[#allocation6 + $0x1e0] ss:$12 sps:$4 sm:$0xff]  }
 0x15c   :  { %1863 = vmatprep.subr.bf16.mxu1 %v2555_v62  ;;  %2334 = vmatprep.subr.bf16.mxu0 %v2556_v63  ;;  %v306_v28 = vadd.f32 %v2863_v38, %v107_v20  ;;  %v2612_v62 = vld [vmem:[#allocation6 + $0x1e8] ss:$12 sps:$4 sm:$0xff]   ;;  %v2639_v20 = vld [vmem:[#allocation6 + $0x28c] ss:$12 sps:$4 sm:$0xff]  }
 0x15d   :  { %1959 = vmatprep.mubr.bf16.mxu0 %v2879_v27  ;;  %v119_v27 = vrot.slane %v2850_v11, %v118_v22  ;;  %v2615_v63 = vld [vmem:[#allocation6 + $0x1fc] ss:$12 sps:$4 sm:$0xff]  }
 0x15e   :  { %v357_v34 = vmax.f32 %v306_v28, 0.0  ;;  %v2634_v22 = vld [vmem:[#allocation6 + $0x270] ss:$12 sps:$4 sm:$0xff]   ;;  %v2648_v28 = vld [vmem:[#allocation6 + $0x2d4] ss:$12 sps:$4 sm:$0xff]  }
 0x15f   :  { %1864 = vmatpush1.bf16.msra.mxu1 %v2553_v0  ;;  %2335 = vmatpush3.bf16.msra.mxu0 %v2557_v1  ;;  %v349_v33 = vadd.f32 %v2867_v44, %v119_v27  ;;  %v2616_v0 = vld [vmem:[#allocation6 + $0x2c0] ss:$12 sps:$4 sm:$0xff]   ;;  %v115_v1 = vrot.slane %v2850_v11, %v114_v60  ;;  %v2623_v11 = vld [vmem:[#allocation6 + $0x228] ss:$12 sps:$4 sm:$0xff]   ;;  %v2643_v27 = vld [vmem:[#allocation6 + $0x2b8] ss:$12 sps:$4 sm:$0xff]  }
 0x160   :  { %1865 = vmatprep.subr.bf16.mxu1 %v2560_v2  ;;  %2336 = vmatprep.subr.bf16.mxu0 %v2561_v3  ;;  %v365_v41 = vpack.c.bf16 %v357_v34, %v357_v34  ;;  %v2613_v2 = vld [vmem:[#allocation6 + $0x1f8] ss:$12 sps:$4 sm:$0xff]   ;;  %v2617_v3 = vld [vmem:[#allocation6 + $0x200] ss:$12 sps:$4 sm:$0xff]  }
 0x161   :  { %v360_v38 = vmax.f32 %v349_v33, 0.0  ;;  %v347_v9 = vadd.f32 %v2865_v40, %v115_v1  ;;  %v2628_v40 = vld [vmem:[#allocation6 + $0x240] ss:$12 sps:$4 sm:$0xff]  }
 0x163   :  { %1866 = vmatpush1.bf16.msra.mxu1 %v2558_v4  ;;  %2337 = vmatpush3.bf16.msra.mxu0 %v2562_v5  ;;  %v368_v44 = vpack.c.bf16 %v360_v38, %v360_v38  ;;  %v2620_v4 = vld [vmem:[#allocation6 + $0x214] ss:$12 sps:$4 sm:$0xff]   ;;  %v2621_v5 = vld [vmem:[#allocation6 + $0x2d8] ss:$12 sps:$4 sm:$0xff]  }
 0x164   :  { %1867 = vmatprep.subr.bf16.mxu1 %v2565_v6  ;;  %2338 = vmatprep.subr.bf16.mxu0 %v2566_v7  ;;  %v2618_v6 = vld [vmem:[#allocation6 + $0x210] ss:$12 sps:$4 sm:$0xff]   ;;  %v2622_v7 = vld [vmem:[#allocation6 + $0x218] ss:$12 sps:$4 sm:$0xff]  }
 0x167   :  { %1868 = vmatpush1.bf16.msra.mxu1 %v2563_v8  ;;  %2339 = vmatpush3.bf16.msra.mxu0 %v2567_v13  ;;  %v2625_v8 = vld [vmem:[#allocation6 + $0x22c] ss:$12 sps:$4 sm:$0xff]   ;;  %v2626_v13 = vld [vmem:[#allocation6 + $0x2f0] ss:$12 sps:$4 sm:$0xff]  }
 0x168   :  { %1869 = vmatprep.subr.bf16.mxu1 %v2570_v14  ;;  %2340 = vmatprep.subr.bf16.mxu0 %v2571_v15  ;;  %v359_v14 = vmax.f32 %v347_v9, 0.0  ;;  %v2627_v15 = vld [vmem:[#allocation6 + $0x230] ss:$12 sps:$4 sm:$0xff]  }
 0x16b   :  { %1870 = vmatpush1.bf16.msra.mxu1 %v2568_v17  ;;  %2341 = vmatpush3.bf16.msra.mxu0 %v2572_v18  ;;  %v367_v17 = vpack.c.bf16 %v359_v14, %v359_v14  ;;  %v2633_v18 = vld [vmem:[#allocation6 + $0x25c] ss:$12 sps:$4 sm:$0xff]  }
 0x16c   :  { %1871 = vmatprep.subr.bf16.mxu1 %v2575_v19  ;;  %2342 = vmatprep.subr.bf16.mxu0 %v2576_v21  ;;  %v2631_v19 = vld [vmem:[#allocation6 + $0x258] ss:$12 sps:$4 sm:$0xff]   ;;  %v2636_v21 = vld [vmem:[#allocation6 + $0x274] ss:$12 sps:$4 sm:$0xff]  }
 0x16f   :  { %1872 = vmatpush1.bf16.msra.mxu1 %v2573_v23  ;;  %2343 = vmatpush3.bf16.msra.mxu0 %v2577_v24  ;;  %v2637_v23 = vld [vmem:[#allocation6 + $0x288] ss:$12 sps:$4 sm:$0xff]   ;;  %v2642_v24 = vld [vmem:[#allocation6 + $0x2a4] ss:$12 sps:$4 sm:$0xff]  }
 0x170   :  { %1873 = vmatprep.subr.bf16.mxu1 %v2580_v25  ;;  %2344 = vmatprep.subr.bf16.mxu0 %v2581_v26  ;;  %v2640_v25 = vld [vmem:[#allocation6 + $0x2a0] ss:$12 sps:$4 sm:$0xff]   ;;  %v2645_v26 = vld [vmem:[#allocation6 + $0x2bc] ss:$12 sps:$4 sm:$0xff]  }
 0x173   :  { %1874 = vmatpush1.bf16.msra.mxu1 %v2578_v29  ;;  %2345 = vmatpush3.bf16.msra.mxu0 %v2582_v30  ;;  %v2646_v29 = vld [vmem:[#allocation6 + $0x2d0] ss:$12 sps:$4 sm:$0xff]   ;;  %v2651_v30 = vld [vmem:[#allocation6 + $0x2ec] ss:$12 sps:$4 sm:$0xff]  }
 0x174   :  { %1875 = vmatprep.subr.bf16.mxu1 %v2585_v31  ;;  %2346 = vmatprep.subr.bf16.mxu0 %v2586_v32  ;;  %v2649_v31 = vld [vmem:[#allocation6 + $0x2e8] ss:$12 sps:$4 sm:$0xff]  }
 0x177   :  { %1876 = vmatpush1.bf16.msra.mxu1 %v2583_v35  ;;  %2347 = vmatpush3.bf16.msra.mxu0 %v2587_v36 }
 0x178   :  { %1886 = vmatprep.subr.bf16.mxu1 %v2590_v37  ;;  %2354 = vmatprep.subr.bf16.mxu0 %v2591_v39  ;;  %v497_v37 = vld [vmem:[%s2928_s4] sm:$0x7] }
 0x179   :  { %v510_v39 = vrot.slane %v497_v37, %v2870_v58 }
 0x17a   :  { %1878 = vmatmul.mubr.bf16.vlgmr.msra.gmra.mrb[16].mxu1 %v365_v41  ;;  %1960 = vmatmul.mubr.bf16.vlgmr.msra.gmra.mrb[12].mxu0 %v365_v41 }
 0x17b   :  { %1887 = vmatpush1.bf16.msra.mxu1 %v2588_v42  ;;  %2355 = vmatpush3.bf16.msra.mxu0 %v2592_v43 }
 0x17c   :  { %1888 = vmatprep.subr.bf16.mxu1 %v2595_v45  ;;  %2356 = vmatprep.subr.bf16.mxu0 %v2596_v46 }
 0x17d   :  { %1999 = vmatprep.mubr.bf16.mxu0 %v368_v44  ;;  %1918 = vmatprep.mubr.bf16.mxu1 %v368_v44 }
 0x17f   :  { %1889 = vmatpush1.bf16.msra.mxu1 %v2593_v47  ;;  %2357 = vmatpush3.bf16.msra.mxu0 %v2597_v48  ;;  %v502_v47 = vrot.slane %v497_v37, %v2845_v10  ;;  %v506_v48 = vrot.slane %v497_v37, %v2853_v12 }
 0x180   :  { %1890 = vmatprep.subr.bf16.mxu1 %v2600_v49  ;;  %2358 = vmatprep.subr.bf16.mxu0 %v2601_v50  ;;  %v2013_v50 = vld [vmem:[%s2931_s7] sm:$0x7] }
 0x183   :  { %1891 = vmatpush1.bf16.msra.mxu1 %v2598_v51  ;;  %2359 = vmatpush3.bf16.msra.mxu0 %v2602_v52  ;;  %v2018_v52 = vrot.slane %v2013_v50, %v2845_v10 }
 0x184   :  { %1892 = vmatprep.subr.bf16.mxu1 %v2605_v53  ;;  %2360 = vmatprep.subr.bf16.mxu0 %v2606_v54 }
 0x187   :  { %1893 = vmatpush1.bf16.msra.mxu1 %v2603_v55  ;;  %2361 = vmatpush3.bf16.msra.mxu0 %v2607_v56  ;;  %v2022_v55 = vrot.slane %v2013_v50, %v2853_v12 }
 0x188   :  { %1894 = vmatprep.subr.bf16.mxu1 %v2610_v57  ;;  %2362 = vmatprep.subr.bf16.mxu0 %v2611_v59 }
 0x18b   :  { %1895 = vmatpush1.bf16.msra.mxu1 %v2608_v61  ;;  %2363 = vmatpush3.bf16.msra.mxu0 %v2612_v62  ;;  %v2026_v62 = vrot.slane %v2013_v50, %v2870_v58 }
 0x18c   :  { %1896 = vmatprep.subr.bf16.mxu1 %v2615_v63  ;;  %2364 = vmatprep.subr.bf16.mxu0 %v2616_v0 }
 0x18f   :  { %1897 = vmatpush1.bf16.msra.mxu1 %v2613_v2  ;;  %2365 = vmatpush3.bf16.msra.mxu0 %v2617_v3 }
 0x190   :  { %1898 = vmatprep.subr.bf16.mxu1 %v2620_v4  ;;  %2366 = vmatprep.subr.bf16.mxu0 %v2621_v5 }
 0x193   :  { %1899 = vmatpush1.bf16.msra.mxu1 %v2618_v6  ;;  %2367 = vmatpush3.bf16.msra.mxu0 %v2622_v7 }
 0x194   :  { %1900 = vmatprep.subr.bf16.mxu1 %v2625_v8  ;;  %2368 = vmatprep.subr.bf16.mxu0 %v2626_v13  ;;  %v1316_v8 = vld [vmem:[%s2930_s6] sm:$0x7] }
 0x195   :  { %v1329_v13 = vrot.slane %v1316_v8, %v2870_v58 }
 0x197   :  { %1901 = vmatpush1.bf16.msra.mxu1 %v2623_v11  ;;  %2369 = vmatpush3.bf16.msra.mxu0 %v2627_v15 }
 0x198   :  { %1902 = vmatprep.subr.bf16.mxu1 %v2630_v16 }
 0x19a   :  { %2000 = vmatmul.mubr.bf16.vlgmr.msra.gmra.mrb[16].mxu0 %v367_v17 }
 0x19b   :  { %1903 = vmatpush1.bf16.msra.mxu1 %v2628_v40 }
 0x19c   :  { %1904 = vmatprep.subr.bf16.mxu1 %v2633_v18 }
 0x19f   :  { %1905 = vmatpush1.bf16.msra.mxu1 %v2631_v19  ;;  %v1321_v19 = vrot.slane %v1316_v8, %v2845_v10 }
 0x1a0   :  { %1906 = vmatprep.subr.bf16.mxu1 %v2636_v21  ;;  %v1325_v21 = vrot.slane %v1316_v8, %v2853_v12 }
 0x1a3   :  { %1907 = vmatpush1.bf16.msra.mxu1 %v2634_v22 }
 0x1a4   :  { %1908 = vmatprep.subr.bf16.mxu1 %v2639_v20  ;;  %v2037_v20 = vld [vmem:[%s2932_s8] sm:$0x7] }
 0x1a7   :  { %1909 = vmatpush1.bf16.msra.mxu1 %v2637_v23 }
 0x1a8   :  { %1910 = vmatprep.subr.bf16.mxu1 %v2642_v24  ;;  %v2042_v24 = vrot.slane %v2037_v20, %v2845_v10  ;;  %v2287_v10 = vld [vmem:[%s2933_s9] ss:$0 sm:$0xff] }
 0x1ab   :  { %1911 = vmatpush1.bf16.msra.mxu1 %v2640_v25 }
 0x1ac   :  { %1912 = vmatprep.subr.bf16.mxu1 %v2645_v26 }
 0x1af   :  { %1913 = vmatpush1.bf16.msra.mxu1 %v2643_v27  ;;  %v2046_v27 = vrot.slane %v2037_v20, %v2853_v12 }
 0x1b0   :  { %1914 = vmatprep.subr.bf16.mxu1 %v2648_v28 }
 0x1b3   :  { %1915 = vmatpush1.bf16.msra.mxu1 %v2646_v29 }
 0x1b4   :  { %1916 = vmatprep.subr.bf16.mxu1 %v2651_v30 }
 0x1b7   :  { %1917 = vmatpush1.bf16.msra.mxu1 %v2649_v31 }
 0x1ba   :  { %1919 = vmatmul.mubr.bf16.vlgmr.msra.gmra.mrb[16].mxu1 %v367_v17 }
 0x1ed   :  { %v2304_v32 = vpop.f32.mrb[8].mxu1 }
 0x1ee   :  { %v2305_v33 = vpop.f32.mrb[9].mxu1 }
 0x1ef   :  { %v2306_v34 = vadd.f32 %v2305_v33, %v2304_v32  ;;  %v2307_v35 = vpop.f32.mrb[10].mxu1  ;;  %v2050_v33 = vrot.slane %v2037_v20, %v2870_v58 }
 0x1f0   :  { %v2308_v36 = vpop.f32.mrb[11].mxu1 }
 0x1f1   :  { %v1143_v42 = vadd.f32 %v2306_v34, %v510_v39 }
 0x20d   :  { %v2326_v38 = vpop.f32.mrb[12].mxu1 }
 0x20e   :  { %v2327_v41 = vpop.f32.mrb[13].mxu1 }
 0x20f   :  { %v2328_v43 = vadd.f32 %v2327_v41, %v2326_v38  ;;  %v2329_v45 = vpop.f32.mrb[14].mxu1 }
 0x210   :  { %v2330_v46 = vpop.f32.mrb[15].mxu1 }
 0x211   :  { %v1183_v44 = vadd.f32 %v2328_v43, %v1143_v42 }
 0x213   :  { %v2009_v60 = vmax.f32 %v1183_v44, 0.0 }
 0x215   :  { %v2032_v1 = vmul.f32 %v2026_v62, %v2009_v60 }
 0x22d   :  { %v1101_v49 = vpop.f32.mrb[8].mxu0 }
 0x22e   :  { %v2376_v51 = vadd.f32 %v1101_v49, %v502_v47  ;;  %v1103_v53 = vpop.f32.mrb[9].mxu0 }
 0x22f   :  { %v2377_v54 = vadd.f32 %v1103_v53, %v506_v48  ;;  %v1105_v56 = vpop.f32.mrb[10].mxu0 }
 0x230   :  { %v2007_v57 = vmax.f32 %v2376_v51, 0.0  ;;  %v1106_v59 = vpop.f32.mrb[11].mxu0 }
 0x231   :  { %v2008_v61 = vmax.f32 %v2377_v54, 0.0 }
 0x232   :  { %v2030_v63 = vmul.f32 %v2018_v52, %v2007_v57 }
 0x233   :  { %v2031_v0 = vmul.f32 %v2022_v55, %v2008_v61 }
 0x235   :  { %v2033_v2 = vadd.f32 %v2031_v0, %v2030_v63 }
 0x237   :  { %v2034_v3 = vadd.f32 %v2033_v2, %v2032_v1 }
 0x239   :  { %2035 = vadd.xlane.f32.xlu0 %v2034_v3 }
 0x24d   :  { %v2348_v4 = vpop.f32.mrb[12].mxu0 }
 0x24e   :  { %v2349_v5 = vpop.f32.mrb[13].mxu0 }
 0x24f   :  { %v2350_v9 = vadd.f32 %v2349_v5, %v2348_v4  ;;  %v2351_v6 = vpop.f32.mrb[14].mxu0 }
 0x250   :  { %v2352_v7 = vpop.f32.mrb[15].mxu0 }
 0x251   :  { %v1962_v15 = vadd.f32 %v2350_v9, %v1329_v13 }
 0x26d   :  { %v2370_v14 = vpop.f32.mrb[16].mxu0 }
 0x26e   :  { %v2371_v11 = vpop.f32.mrb[17].mxu0 }
 0x26f   :  { %v2372_v16 = vadd.f32 %v2371_v11, %v2370_v14  ;;  %v2373_v17 = vpop.f32.mrb[18].mxu0 }
 0x270   :  { %v2374_v40 = vpop.f32.mrb[19].mxu0 }
 0x271   :  { %v2002_v18 = vadd.f32 %v2372_v16, %v1962_v15 }
 0x273   :  { %v2012_v31 = vmax.f32 %v2002_v18, 0.0 }
 0x275   :  { %v2056_v36 = vmul.f32 %v2050_v33, %v2012_v31 }
 0x28d   :  { %v1920_v22 = vpop.f32.mrb[16].mxu1 }
 0x28e   :  { %v2378_v23 = vadd.f32 %v1920_v22, %v1321_v19  ;;  %v1922_v25 = vpop.f32.mrb[17].mxu1 }
 0x28f   :  { %v2379_v26 = vadd.f32 %v1922_v25, %v1325_v21  ;;  %v1924_v28 = vpop.f32.mrb[18].mxu1 }
 0x290   :  { %v2010_v29 = vmax.f32 %v2378_v23, 0.0  ;;  %v1925_v30 = vpop.f32.mrb[19].mxu1 }
 0x291   :  { %v2011_v32 = vmax.f32 %v2379_v26, 0.0 }
 0x292   :  { %v2054_v34 = vmul.f32 %v2042_v24, %v2010_v29 }
 0x293   :  { %v2055_v35 = vmul.f32 %v2046_v27, %v2011_v32 }
 0x295   :  { %v2057_v37 = vadd.f32 %v2055_v35, %v2054_v34 }
 0x297   :  { %v2058_v39 = vadd.f32 %v2057_v37, %v2056_v36 }
 0x299   :  { %2059 = vadd.xlane.f32.xlu0 %v2058_v39 }
 0x2c6   :  { %v2036_v38 = vpop.xlane.xlu0 %2035 }
 0x326   :  { %v2060_v12 = vpop.xlane.xlu0 %2059 }
 0x327   :  { %v2062_v41 = vsel %vm2061_vm2, %v2036_v38, %v2060_v12 }
 0x328   :  { %v2070_v42 = vadd.f32 %v2287_v10, %v2062_v41 }
 0x32a   :  { %2072 = vst.msk [vmem:[%s2934_s10] sm:$0xff] %vm2071_vm3, %v2070_v42 }
 0x32b   :  { %2077 = vsyncpa [#allocation3], 1 }
 0x32c   :  { %2078 = vsyncpa [#allocation5], 1 }

</bundles_post_ra>
